<compile_context>
chip_gen: v6e
topology: v6e:2x2x1
jax: 0.10.0
libtpu: 0.0.40
codegen_flags: <defaults>
</compile_context>

<pallas_src>
import numpy as np
import jax
import jax.numpy as jnp
from jax.experimental import pallas as pl
from jax.experimental.pallas import tpu as pltpu

# ---- problem sizes (small, consistent with the module) ----
B = 2                    # batch
CIN = 3                  # in_chans
H = W = 16               # input spatial
PS = 4                   # patch / conv kernel size (patch_size=[4])
STRIDE = 2               # Conv2d stride in PatchEmbed
PAD = (PS - STRIDE) // 2 # = 1
HP, WP = H // STRIDE, W // STRIDE
L = HP * WP              # 64 tokens
C = 128                  # embed_dim (lane-dense)
K = CIN * PS * PS        # 48 im2col contraction dim
LN_EPS = 1e-5            # nn.LayerNorm default eps


def patch_embed_kernel(cols_ref, wmat_ref, bias_ref, ecaw_ref, gamma_ref,
                       beta_ref, o_ref):
    # cols_ref : (1, L, K)  im2col'd patches for this batch element
    # wmat_ref : (K, C)     conv weight, (cin,kh,kw)-major x Cout
    # bias_ref : (1, C)     conv bias
    # ecaw_ref : (3,) SMEM  eca Conv1d(1,1,3) taps
    # gamma/beta_ref : (1, C)  LayerNorm affine
    # o_ref    : (1, L, C)
    cols = cols_ref[0]                                       # (L, K)

    # ---- proj conv (k=4, s=2, p=1) as a single im2col matmul on the MXU ----
    # default precision (single-pass bf16), f32 accumulation.
    y = jax.lax.dot_general(cols, wmat_ref[...],
                            dimension_numbers=(((1,), (0,)), ((), ())),
                            preferred_element_type=jnp.float32)
    y = y + bias_ref[...]                                    # (L, C)

    # ---- eca channel attention:  x * sigmoid(conv1d_k3(avgpool(x))) + x ----
    m = jnp.mean(y, axis=0, keepdims=True)                   # (1, C) global avg pool
    lane = jax.lax.broadcasted_iota(jnp.int32, (1, C), 1)
    m_prev = jnp.where(lane == 0, 0.0,
                       pltpu.roll(m, shift=1, axis=1))        # m[c-1], zero-pad edge
    m_next = jnp.where(lane == C - 1, 0.0,
                       pltpu.roll(m, shift=C - 1, axis=1))    # m[c+1], zero-pad edge
    att = ecaw_ref[0] * m_prev + ecaw_ref[1] * m + ecaw_ref[2] * m_next
    att = jax.nn.sigmoid(att)                                 # (1, C)
    y = y * (1.0 + att)                                       # x * att + x

    # ---- LayerNorm over channels (per token) ----
    mu = jnp.mean(y, axis=1, keepdims=True)                   # (L, 1)
    var = jnp.mean(jnp.square(y - mu), axis=1, keepdims=True)
    inv = jax.lax.rsqrt(var + LN_EPS)
    o_ref[0] = ((y - mu) * inv * gamma_ref[...] + beta_ref[...]).astype(o_ref.dtype)


def _im2col(x):
    """x: (B, Cin, H, W) -> (B, L, Cin*PS*PS); patch order = (cin, kh, kw)."""
    b, cin, h, w = x.shape
    hp, wp = h // STRIDE, w // STRIDE
    xp = jnp.pad(x, ((0, 0), (0, 0), (PAD, PAD), (PAD, PAD)))
    taps = [xp[:, :, kh:kh + STRIDE * hp:STRIDE, kw:kw + STRIDE * wp:STRIDE]
            for kh in range(PS) for kw in range(PS)]
    p = jnp.stack(taps, axis=2)                       # (B, Cin, PS*PS, HP, WP)
    p = p.reshape(b, cin * PS * PS, hp * wp)          # (cin, kh, kw) flattened
    return jnp.transpose(p, (0, 2, 1))                # (B, L, K)


def patch_embed(x, w_proj, b_proj, eca_w, gamma, beta):
    """x: (B, Cin, H, W) f32; w_proj: (C, Cin, PS, PS); b_proj: (C,);
    eca_w: (3,); gamma/beta: (C,).  Returns (B, L, C)."""
    cols = _im2col(x)                                  # (B, L, K)  layout plumbing
    wmat = jnp.transpose(w_proj.reshape(C, K))         # (K, C)

    kernel = pl.pallas_call(
        patch_embed_kernel,
        out_shape=jax.ShapeDtypeStruct((B, L, C), x.dtype),
        grid_spec=pltpu.PrefetchScalarGridSpec(
            num_scalar_prefetch=0,
            grid=(B,),
            in_specs=[
                pl.BlockSpec((1, L, K), lambda n: (n, 0, 0)),     # im2col cols
                pl.BlockSpec((K, C), lambda n: (0, 0)),           # conv weight (resident)
                pl.BlockSpec((1, C), lambda n: (0, 0)),           # conv bias
                pl.BlockSpec(memory_space=pltpu.MemorySpace.SMEM),  # eca taps (3,)
                pl.BlockSpec((1, C), lambda n: (0, 0)),           # LN gamma
                pl.BlockSpec((1, C), lambda n: (0, 0)),           # LN beta
            ],
            out_specs=pl.BlockSpec((1, L, C), lambda n: (n, 0, 0)),
        ),
        compiler_params=pltpu.CompilerParams(
            dimension_semantics=("parallel",)),
    )
    return kernel(cols, wmat, b_proj.reshape(1, C), eca_w,
                  gamma.reshape(1, C), beta.reshape(1, C))


def patch_embed_ref(x, w_proj, b_proj, eca_w, gamma, beta):
    """Pure-JAX reference mirroring the PyTorch forward (f32, HIGHEST precision)."""
    y = jax.lax.conv_general_dilated(
        x, w_proj, window_strides=(STRIDE, STRIDE),
        padding=((PAD, PAD), (PAD, PAD)),
        dimension_numbers=('NCHW', 'OIHW', 'NCHW'),
        precision=jax.lax.Precision.HIGHEST)
    y = y + b_proj[None, :, None, None]
    # eca_layer
    m = jnp.mean(y, axis=(2, 3))                       # (B, C) adaptive avg pool
    mp = jnp.pad(m, ((0, 0), (1, 1)))
    att = eca_w[0] * mp[:, :-2] + eca_w[1] * mp[:, 1:-1] + eca_w[2] * mp[:, 2:]
    att = jax.nn.sigmoid(att)
    y = y * att[:, :, None, None] + y
    # flatten(2).transpose(1, 2)
    b, c, hp, wp = y.shape
    t = y.reshape(b, c, hp * wp).transpose(0, 2, 1)    # (B, L, C)
    # LayerNorm(embed_dim)
    mu = t.mean(-1, keepdims=True)
    var = jnp.mean(jnp.square(t - mu), -1, keepdims=True)
    return (t - mu) / jnp.sqrt(var + LN_EPS) * gamma + beta


if __name__ == "__main__":
    key = jax.random.PRNGKey(0)
    kx, kw, kb, ke = jax.random.split(key, 4)

    x = jax.random.normal(kx, (B, CIN, H, W), jnp.float32)
    w_proj = jax.random.normal(kw, (C, CIN, PS, PS), jnp.float32) * 0.1
    b_proj = jax.random.normal(kb, (C,), jnp.float32) * 0.1
    eca_w = jax.random.normal(ke, (3,), jnp.float32) * 0.5
    ar = jnp.arange(C, dtype=jnp.float32)
    gamma = 1.0 + 0.001 * ar                 # LayerNorm weight
    beta = 0.01 * (ar - C / 2) / C           # LayerNorm bias

    out = jax.block_until_ready(patch_embed(x, w_proj, b_proj, eca_w, gamma, beta))
    ref = jax.block_until_ready(patch_embed_ref(x, w_proj, b_proj, eca_w, gamma, beta))
    # Kernel uses default (single-pass bf16) MXU precision with f32 accumulation;
    # reference is f32 HIGHEST, so allow bf16-level tolerance.
    np.testing.assert_allclose(np.asarray(out), np.asarray(ref),
                               rtol=2e-2, atol=2e-2)
    print("KERNEL_OK")
</pallas_src>

<mosaic_0001>
module attributes {stable_mosaic.version = 11 : i64} {
  func.func @patch_embed_kernel(%arg0: i32, %arg1: memref<1x64x48xf32, #tpu.memory_space<vmem>>, %arg2: memref<48x128xf32, #tpu.memory_space<vmem>>, %arg3: memref<1x128xf32, #tpu.memory_space<vmem>>, %arg4: memref<3xf32, #tpu.memory_space<smem>>, %arg5: memref<1x128xf32, #tpu.memory_space<vmem>>, %arg6: memref<1x128xf32, #tpu.memory_space<vmem>>, %arg7: memref<1x64x128xf32, #tpu.memory_space<vmem>>) attributes {dimension_semantics = [#tpu.dimension_semantics<parallel>], iteration_bounds = array<i64: 2>, scalar_prefetch = 0 : i64, scratch_operands = 0 : i64, tpu.core_type = #tpu.core_type<tc>, window_params = [{transform_indices = @transform_0, window_bounds = array<i64: 1, 64, 48>}, {pipeline_mode = #tpu.pipeline_mode<synchronous>, transform_indices = @transform_1, window_bounds = array<i64: 48, 128>}, {pipeline_mode = #tpu.pipeline_mode<synchronous>, transform_indices = @transform_2, window_bounds = array<i64: 1, 128>}, {transform_indices = @transform_3, window_bounds = array<i64: 3>}, {pipeline_mode = #tpu.pipeline_mode<synchronous>, transform_indices = @transform_4, window_bounds = array<i64: 1, 128>}, {pipeline_mode = #tpu.pipeline_mode<synchronous>, transform_indices = @transform_5, window_bounds = array<i64: 1, 128>}, {transform_indices = @transform_6, window_bounds = array<i64: 1, 64, 128>}]} {
    %c0 = arith.constant 0 : index
    %c0_0 = arith.constant 0 : index
    %c0_1 = arith.constant 0 : index
    %0 = vector.load %arg1[%c0, %c0_0, %c0_1] : memref<1x64x48xf32, #tpu.memory_space<vmem>>, vector<1x64x48xf32>
    %1 = vector.shape_cast %0 : vector<1x64x48xf32> to vector<64x48xf32>
    %c0_2 = arith.constant 0 : index
    %c0_3 = arith.constant 0 : index
    %2 = vector.load %arg2[%c0_2, %c0_3] : memref<48x128xf32, #tpu.memory_space<vmem>>, vector<48x128xf32>
    %cst = arith.constant dense<0.000000e+00> : vector<64x128xf32>
    %3 = tpu.matmul %1, %2, %cst {dimension_numbers = #tpu.dot_dimension_numbers<[1], [0], [0], [1], [0, 0, 1, 1], [], []>} : vector<64x48xf32>, vector<48x128xf32>, vector<64x128xf32> -> vector<64x128xf32>
    %c0_4 = arith.constant 0 : index
    %c0_5 = arith.constant 0 : index
    %4 = vector.load %arg3[%c0_4, %c0_5] : memref<1x128xf32, #tpu.memory_space<vmem>>, vector<1x128xf32>
    %5 = vector.broadcast %4 : vector<1x128xf32> to vector<64x128xf32>
    %6 = arith.addf %3, %5 : vector<64x128xf32>
    %cst_6 = arith.constant dense<0.000000e+00> : vector<128xf32>
    %7 = vector.multi_reduction <add>, %6, %cst_6 [0] : vector<64x128xf32> to vector<128xf32>
    %8 = vector.shape_cast %7 : vector<128xf32> to vector<1x128xf32>
    %cst_7 = arith.constant 6.400000e+01 : f32
    %9 = vector.broadcast %cst_7 : f32 to vector<1x128xf32>
    %10 = arith.divf %8, %9 : vector<1x128xf32>
    %11 = tpu.iota {dimensions = array<i32: 1>} : vector<1x128xi32>
    %c0_i32 = arith.constant 0 : i32
    %12 = vector.broadcast %c0_i32 : i32 to vector<1x128xi32>
    %13 = arith.cmpi eq, %11, %12 : vector<1x128xi32>
    %c1_i32 = arith.constant 1 : i32
    %14 = tpu.dynamic_rotate %10 by %c1_i32 dim 1 : vector<1x128xf32>, i32 -> vector<1x128xf32>
    %cst_8 = arith.constant 0.000000e+00 : f32
    %15 = vector.broadcast %cst_8 : f32 to vector<1x128xf32>
    %16 = arith.select %13, %15, %14 : vector<1x128xi1>, vector<1x128xf32>
    %c127_i32 = arith.constant 127 : i32
    %17 = vector.broadcast %c127_i32 : i32 to vector<1x128xi32>
    %18 = arith.cmpi eq, %11, %17 : vector<1x128xi32>
    %c127_i32_9 = arith.constant 127 : i32
    %19 = tpu.dynamic_rotate %10 by %c127_i32_9 dim 1 : vector<1x128xf32>, i32 -> vector<1x128xf32>
    %cst_10 = arith.constant 0.000000e+00 : f32
    %20 = vector.broadcast %cst_10 : f32 to vector<1x128xf32>
    %21 = arith.select %18, %20, %19 : vector<1x128xi1>, vector<1x128xf32>
    %c0_11 = arith.constant 0 : index
    %22 = memref.load %arg4[%c0_11] : memref<3xf32, #tpu.memory_space<smem>>
    %23 = vector.broadcast %22 : f32 to vector<1x128xf32>
    %24 = arith.mulf %23, %16 : vector<1x128xf32>
    %c1 = arith.constant 1 : index
    %25 = memref.load %arg4[%c1] : memref<3xf32, #tpu.memory_space<smem>>
    %26 = vector.broadcast %25 : f32 to vector<1x128xf32>
    %27 = arith.mulf %26, %10 : vector<1x128xf32>
    %28 = arith.addf %24, %27 : vector<1x128xf32>
    %c2 = arith.constant 2 : index
    %29 = memref.load %arg4[%c2] : memref<3xf32, #tpu.memory_space<smem>>
    %30 = vector.broadcast %29 : f32 to vector<1x128xf32>
    %31 = arith.mulf %30, %21 : vector<1x128xf32>
    %32 = arith.addf %28, %31 : vector<1x128xf32>
    %33 = arith.negf %32 : vector<1x128xf32>
    %34 = math.exp %33 : vector<1x128xf32>
    %cst_12 = arith.constant 1.000000e+00 : f32
    %35 = vector.broadcast %cst_12 : f32 to vector<1x128xf32>
    %36 = arith.addf %35, %34 : vector<1x128xf32>
    %37 = arith.divf %35, %36 : vector<1x128xf32>
    %cst_13 = arith.constant 1.000000e+00 : f32
    %38 = vector.broadcast %cst_13 : f32 to vector<1x128xf32>
    %39 = arith.addf %38, %37 : vector<1x128xf32>
    %40 = vector.broadcast %39 : vector<1x128xf32> to vector<64x128xf32>
    %41 = arith.mulf %6, %40 : vector<64x128xf32>
    %cst_14 = arith.constant dense<0.000000e+00> : vector<64xf32>
    %42 = vector.multi_reduction <add>, %41, %cst_14 [1] : vector<64x128xf32> to vector<64xf32>
    %43 = vector.shape_cast %42 : vector<64xf32> to vector<64x1xf32>
    %cst_15 = arith.constant 1.280000e+02 : f32
    %44 = vector.broadcast %cst_15 : f32 to vector<64x1xf32>
    %45 = arith.divf %43, %44 : vector<64x1xf32>
    %46 = vector.broadcast %45 : vector<64x1xf32> to vector<64x128xf32>
    %47 = arith.subf %41, %46 : vector<64x128xf32>
    %48 = arith.mulf %47, %47 : vector<64x128xf32>
    %cst_16 = arith.constant dense<0.000000e+00> : vector<64xf32>
    %49 = vector.multi_reduction <add>, %48, %cst_16 [1] : vector<64x128xf32> to vector<64xf32>
    %50 = vector.shape_cast %49 : vector<64xf32> to vector<64x1xf32>
    %cst_17 = arith.constant 1.280000e+02 : f32
    %51 = vector.broadcast %cst_17 : f32 to vector<64x1xf32>
    %52 = arith.divf %50, %51 : vector<64x1xf32>
    %cst_18 = arith.constant 9.99999974E-6 : f32
    %53 = vector.broadcast %cst_18 : f32 to vector<64x1xf32>
    %54 = arith.addf %52, %53 : vector<64x1xf32>
    %55 = math.rsqrt %54 : vector<64x1xf32>
    %56 = vector.broadcast %45 : vector<64x1xf32> to vector<64x128xf32>
    %57 = arith.subf %41, %56 : vector<64x128xf32>
    %58 = vector.broadcast %55 : vector<64x1xf32> to vector<64x128xf32>
    %59 = arith.mulf %57, %58 : vector<64x128xf32>
    %c0_19 = arith.constant 0 : index
    %c0_20 = arith.constant 0 : index
    %60 = vector.load %arg5[%c0_19, %c0_20] : memref<1x128xf32, #tpu.memory_space<vmem>>, vector<1x128xf32>
    %61 = vector.broadcast %60 : vector<1x128xf32> to vector<64x128xf32>
    %62 = arith.mulf %59, %61 : vector<64x128xf32>
    %c0_21 = arith.constant 0 : index
    %c0_22 = arith.constant 0 : index
    %63 = vector.load %arg6[%c0_21, %c0_22] : memref<1x128xf32, #tpu.memory_space<vmem>>, vector<1x128xf32>
    %64 = vector.broadcast %63 : vector<1x128xf32> to vector<64x128xf32>
    %65 = arith.addf %62, %64 : vector<64x128xf32>
    %c0_23 = arith.constant 0 : index
    %c0_24 = arith.constant 0 : index
    %c0_25 = arith.constant 0 : index
    %66 = vector.load %arg7[%c0_23, %c0_24, %c0_25] : memref<1x64x128xf32, #tpu.memory_space<vmem>>, vector<1x64x128xf32>
    %67 = vector.shape_cast %66 : vector<1x64x128xf32> to vector<64x128xf32>
    %68 = vector.shape_cast %65 : vector<64x128xf32> to vector<1x64x128xf32>
    tpu.vector_store %arg7[%c0_23, %c0_24, %c0_25], %68 {strides = array<i32>} : memref<1x64x128xf32, #tpu.memory_space<vmem>>, vector<1x64x128xf32>,
    return
  }
  func.func @transform_0(%arg0: i32) -> (i32, i32, i32) {
    %c0_i32 = arith.constant 0 : i32
    %c0_i32_0 = arith.constant 0 : i32
    %c0_i32_1 = arith.constant 0 : i32
    return %arg0, %c0_i32, %c0_i32_0 : i32, i32, i32
  }
  func.func @transform_1(%arg0: i32) -> (i32, i32) {
    %c0_i32 = arith.constant 0 : i32
    %c0_i32_0 = arith.constant 0 : i32
    %c0_i32_1 = arith.constant 0 : i32
    return %c0_i32, %c0_i32_0 : i32, i32
  }
  func.func @transform_2(%arg0: i32) -> (i32, i32) {
    %c0_i32 = arith.constant 0 : i32
    %c0_i32_0 = arith.constant 0 : i32
    %c0_i32_1 = arith.constant 0 : i32
    return %c0_i32, %c0_i32_0 : i32, i32
  }
  func.func @transform_3(%arg0: i32) -> i32 {
    %c0_i32 = arith.constant 0 : i32
    %c0_i32_0 = arith.constant 0 : i32
    return %c0_i32 : i32
  }
  func.func @transform_4(%arg0: i32) -> (i32, i32) {
    %c0_i32 = arith.constant 0 : i32
    %c0_i32_0 = arith.constant 0 : i32
    %c0_i32_1 = arith.constant 0 : i32
    return %c0_i32, %c0_i32_0 : i32, i32
  }
  func.func @transform_5(%arg0: i32) -> (i32, i32) {
    %c0_i32 = arith.constant 0 : i32
    %c0_i32_0 = arith.constant 0 : i32
    %c0_i32_1 = arith.constant 0 : i32
    return %c0_i32, %c0_i32_0 : i32, i32
  }
  func.func @transform_6(%arg0: i32) -> (i32, i32, i32) {
    %c0_i32 = arith.constant 0 : i32
    %c0_i32_0 = arith.constant 0 : i32
    %c0_i32_1 = arith.constant 0 : i32
    return %arg0, %c0_i32, %c0_i32_0 : i32, i32, i32
  }
}

</mosaic_0001>

<bundles_post_ra>
// kernel: tpu_custom_call.1
= control target key start
LH: loop header
LB: loop body
LE: loop exit
PB: predicated region body
PF: predicated region fallthrough
CT: control target
= control target key end

     0   :  { %11 = vsyncpa [#allocation4], 0  ;;  %s1171_s0 = inlined_call_operand.vmem [shape: f32[2,64,48], index: 0, kind: input, shape index: {}]   ;;  %s1172_s1 = inlined_call_operand.vmem [shape: f32[48,128], index: 1, kind: input, shape index: {}]   ;;  %s1173_s2 = inlined_call_operand.vmem [shape: f32[1,128], index: 2, kind: input, shape index: {}]   ;;  %s1174_s3 = inlined_call_operand.vmem [shape: f32[3], index: 3, kind: input, shape index: {}]   ;;  %s1175_s4 = inlined_call_operand.vmem [shape: f32[1,128], index: 4, kind: input, shape index: {}]   ;;  %s1176_s5 = inlined_call_operand.vmem [shape: f32[1,128], index: 5, kind: input, shape index: {}]   ;;  %s1177_s6 = inlined_call_operand.hbm [shape: f32[2,64,128], index: 6, kind: output, shape index: {}]  }
   0x1   :  { %12 = vsyncpa [#allocation3], 0 }
   0x2   :  { %14 = vsyncpa [#allocation3 + $0x1], 0  ;;  %s961_s21 = smov 0   ;;  %s963_s22 = smov 0  }
   0x3   :  { %s965_s23 = smov 0   ;;  %s967_s24 = smov 0  }
   0x4 LB: > { %s982_s25 = sadd.s32 4294967295, %s918_s24   ;;  %s685_s26 = sadd.s32 4294967294, %s918_s24   ;;  %s918_s24 = sphi %s967_s24, %s1184_s24   ;;  %s914_s23 = sphi %s965_s23, %s1183_s23   ;;  %s910_s22 = sphi %s963_s22, %s1182_s22   ;;  %s906_s21 = sphi %s961_s21, %s1181_s21  }
   0x5   : > { %s986_s27 = sadd.s32 1, %s918_s24   ;;  %s158_s28 = sadd.s32 1, %s914_s23 }
   0x6   : > { %s155_s29 = ssub.s32 %s918_s24, %s986_s27  ;;  %p168_p0 = scmp.ne.s32.totalorder %s914_s23, %s910_s22 }
   0x7   : > { %p156_p1 = scmp.eq.s32.totalorder %s155_s29, 0  ;;  %p169_p2 = scmp.eq.s32.totalorder %s982_s25, 1 }
   0x8   : > { %p174_p3 = scmp.ne.s32.totalorder %s910_s22, %s906_s21  ;;  %p175_p4 = scmp.eq.s32.totalorder %s685_s26, 1 }
   0x9   : > { %s997_s30 = scalar_select %p156_p1, %s914_s23, %s158_s28  }
   0xa   : > { %p999_p5 = por %p169_p2, %p168_p0  ;;  %p1003_p6 = por %p175_p4, %p174_p3 }
   0xb   : > { %p686_p7 = scmp.ge.s32.totalorder %s918_s24, 1  ;;  %p182_p8 = scmp.lt.s32.totalorder %s918_s24, 3 }
   0xc   : > { %p779_p9 = scmp.eq.s32.totalorder %s982_s25, 0  ;;  %s201_s12 = sshll.u32 %s1174_s3, 4  ;;  %s202_s12 = int_to_ptr.vmem [resolvable:$true] %s201_s12 }
   0xd   : > { %p1010_p10 = pnand %p686_p7, %p182_p8  ;;  %s839_s13 = scalar_lea.vmem %s202_s12, 16 }
   0xe   : > { %p840_p13 = scmp.ne.s32.totalorder %s202_s12, %s839_s13  ;;  %p847_p3 = scmp.lt.s32.totalorder %s202_s12, %s202_s12 }
   0xf   : > { %p771_p11 = pneg %p1010_p10  ;;  %p848_p4 = scmp.lt.s32.totalorder %s839_s13, %s839_s13 }
  0x11   : > { %p772_p12 = pnand %p779_p9, %p771_p11  ;;  %p849_p7 = por %p848_p4, %p847_p3 }
  0x13   : > { %p841_p0 = pneg %p772_p12 }
  0x15   : > { %p842_p1 = pnand %p841_p0, %p840_p13 }
  0x17   : > { %p843_p2 = pneg %p842_p1 }
  0x19   : > { %p850_p8 = pnand %p849_p7, %p843_p2 }
  0x1b   : > { %853 = shalt.err (!%p850_p8)
}
  0x1c   : > { %s920_s14 = smov [#allocation2]   ;;  %228 = sbr.rel (%p1010_p10) target bundleno = 782 (0x30e), region = 44 }
  0x1d   : > { %774 = dma.vmem_to_smem (!%p772_p12), %s202_s12, 16, %s920_s14, [#allocation4]  }
  0x21   : > { %897 = dma.done.wait (%p779_p9), [#allocation4], 16  }
  0x22   : > { %899 = vsyncadd (%p779_p9), [#allocation4], 4294967280 }
  0x23   : > { %234 = sfence }
  0x24   : > { %v277_v0 = vld [vmem:[%s1172_s1 + $0x28] sm:$0xff]  ;;  %v276_v1 = vld [vmem:[%s1172_s1 + $0x20] sm:$0xff]  ;;  %p259_p11 = scmp.lt.s32.totalorder %s982_s25, 1  ;;  %v275_v2 = vld [vmem:[%s1172_s1 + $0x18] sm:$0xff]  ;;  %vm285_vm0 = vcmask 392192   ;;  %s921_s19 = smov 1   ;;  %v430_v45 = vlaneseq }
  0x25   : > { %729 = vmatprep.subr.mxu0 %v277_v0  ;;  %753 = vmatprep.subr.mxu1 %v277_v0  ;;  %v274_v3 = vld [vmem:[%s1172_s1 + $0x10] sm:$0xff]  ;;  %v273_v4 = vld [vmem:[%s1172_s1 + $0x8] sm:$0xff]  ;;  %v272_v6 = vld [vmem:[%s1172_s1] sm:$0xff]  ;;  %s922_s20 = smov 127   ;;  %s703_s28 = sld [smem:[#allocation2 + $0x1]] }
  0x26   : > { %730 = vmatpush3.msra.mxu0 %v277_v0  ;;  %759 = vmatpush3.msra.mxu1 %v277_v0  ;;  %s260_s26 = scalar_select %p259_p11, %s982_s25, 1  ;;  %v694_v15 = vld [vmem:[%s1173_s2] ss:$0 sm:$0xff]  ;;  %v431_v46 = vand.u32 127, %v430_v45  ;;  %v459_v62 = vshrl.u32 %v430_v45, 7 }
  0x27   : > { %731 = vmatprep.subr.mxu0 %v276_v1  ;;  %754 = vmatprep.subr.mxu1 %v276_v1  ;;  %s704_s29 = sld [smem:[#allocation2 + $0x2]]  ;;  %s714_s16 = sshll.u32 %s982_s25, 10 }
  0x28   : > { %732 = vmatpush3.msra.mxu0 %v276_v1  ;;  %760 = vmatpush3.msra.mxu1 %v276_v1  ;;  %s713_s9 = sshll.u32 %s260_s26, 6  ;;  %s440_s26 = sld [smem:[#allocation2]]  ;;  %vm432_vm1 = vcmp.eq.s32.totalorder %v431_v46, 0  ;;  %vm436_vm2 = vcmp.eq.s32.totalorder %v431_v46, 127  ;;  %v460_v63 = vsub.s32 0, %v459_v62 }
  0x29   : > { %733 = vmatprep.subr.mxu0 %v275_v2  ;;  %755 = vmatprep.subr.mxu1 %v275_v2  ;;  %s263_s12 = scalar_lea.vmem %s1171_s0, %s713_s9  ;;  %s256_s9 = sand.u32 1, %s910_s22  }
  0x2a   : > { %734 = vmatpush3.msra.mxu0 %v275_v2  ;;  %761 = vmatpush3.msra.mxu1 %v275_v2  ;;  %v264_v5 = vld [vmem:[%s263_s12] sm:$0xff]  ;;  %v265_v7 = vld [vmem:[%s263_s12 + $0x8] sm:$0xff]  ;;  %v266_v8 = vld [vmem:[%s263_s12 + $0x10] sm:$0xff]  ;;  %s923_s25 = smov [#allocation5]  }
  0x2b   : > { %735 = vmatprep.subr.mxu0 %v274_v3  ;;  %741 = vmatprep.mubr.msk.f32.mxu0 %vm285_vm0, %v264_v5  ;;  %v268_v9 = vld [vmem:[%s263_s12 + $0x20] sm:$0xff]  ;;  %v269_v10 = vld [vmem:[%s263_s12 + $0x28] sm:$0xff]  ;;  %v270_v11 = vld [vmem:[%s263_s12 + $0x30] sm:$0xff]  ;;  %v444_v49 = vstv %s703_s28 }
  0x2c   : > { %736 = vmatpush3.msra.mxu0 %v274_v3  ;;  %756 = vmatprep.subr.mxu1 %v274_v3  ;;  %v267_v12 = vld [vmem:[%s263_s12 + $0x18] sm:$0xff] }
  0x2d   : > { %737 = vmatprep.subr.mxu0 %v273_v4  ;;  %762 = vmatpush3.msra.mxu1 %v274_v3  ;;  %v271_v13 = vld [vmem:[%s263_s12 + $0x38] sm:$0xff]  ;;  %v448_v52 = vstv %s704_s29  ;;  %s691_s12 = sshll.u32 %s256_s9, 6  ;;  %s858_s29 = sshll.u32 %s923_s25, 4  ;;  %s859_s29 = int_to_ptr.vmem [resolvable:$false] %s858_s29 }
  0x2e   : > { %738 = vmatpush3.msra.mxu0 %v273_v4  ;;  %757 = vmatprep.subr.mxu1 %v273_v4  ;;  %v441_v47 = vstv %s440_s26  ;;  %s1104_s15 = scalar_lea.vmem [#allocation5], %s691_s12  ;;  %s1131_s26 = scalar_lea.sflag [#allocation3], %s256_s9 }
  0x2f   : > { %739 = vmatprep.subr.mxu0 %v272_v6  ;;  %763 = vmatpush3.msra.mxu1 %v273_v4  ;;  %s611_s17 = sshll.u32 %s1104_s15, 4  ;;  %s860_s10 = scalar_lea.vmem %s859_s29, 2048  ;;  %s1126_s17 = int_to_ptr.vmem [resolvable:$true] %s611_s17 }
  0x30   : > { %740 = vmatpush3.msra.mxu0 %v272_v6  ;;  %758 = vmatprep.subr.mxu1 %v272_v6  ;;  %s854_s28 = scalar_lea.vmem %s1126_s17, 1024  ;;  %p861_p13 = scmp.lt.s32.totalorder %s1126_s17, %s859_s29 }
  0x31   : > { %742 = vmatmul.mubr.msk.f32.vlgmr.msra.gmra.mxu0 %vm285_vm0, %v265_v7  ;;  %764 = vmatpush3.msra.mxu1 %v272_v6  ;;  %p855_p9 = scmp.ne.s32.totalorder %s1126_s17, %s854_s28  ;;  %p862_p0 = scmp.lt.s32.totalorder %s860_s10, %s854_s28 }
  0x32   : > { %744 = vmatprep.mubr.msk.f32.mxu0 %vm285_vm0, %v266_v8  ;;  %747 = vmatprep.mubr.msk.f32.mxu1 %vm285_vm0, %v268_v9 }
  0x33   : > { %748 = vmatmul.mubr.msk.f32.vlgmr.msra.gmra.mxu1 %vm285_vm0, %v269_v10  ;;  %p856_p10 = pnand %p855_p9, %p999_p5  ;;  %p863_p1 = por %p862_p0, %p861_p13 }
  0x34   : > { %750 = vmatprep.mubr.msk.f32.mxu1 %vm285_vm0, %v270_v11 }
  0x35   : > { %745 = vmatmul.mubr.msk.f32.gmra.mxu0 %vm285_vm0, %v267_v12  ;;  %p857_p12 = pneg %p856_p10 }
  0x37   : > { %751 = vmatmul.mubr.msk.f32.gmra.mxu1 %vm285_vm0, %v271_v13  ;;  %p864_p2 = pnand %p863_p1, %p857_p12 }
  0xf1   : > { %v743_v14 = vpop.f32.mrf.mxu0 }
  0xf2   : > { %v382_v21 = vadd.f32 %v743_v14, %v694_v15 }
  0xf3   : > { %v376_v16 = vpop.f32.mrf.mxu0  ;;  %v749_v17 = vpop.f32.mrf.mxu1 }
  0xf4   : > { %v377_v18 = vadd.f32 %v694_v15, %v376_v16  ;;  %v402_v31 = vadd.f32 %v749_v17, %v694_v15 }
  0xf5   : > { %v746_v19 = vpop.f32.mrf.mxu0  ;;  %v396_v20 = vpop.f32.mrf.mxu1 }
  0xf6   : > { %v415_v23 = vadd.f32 %v382_v21, %v377_v18  ;;  %v392_v26 = vadd.f32 %v746_v19, %v694_v15  ;;  %v397_v28 = vadd.f32 %v694_v15, %v396_v20 }
  0xf7   : > { %v386_v22 = vpop.f32.mrf.mxu0  ;;  %v752_v25 = vpop.f32.mrf.mxu1 }
  0xf8   : > { %v387_v24 = vadd.f32 %v694_v15, %v386_v22  ;;  %v412_v35 = vadd.f32 %v752_v25, %v694_v15 }
  0xf9   : > { %v406_v30 = vpop.f32.mrf.mxu1 }
  0xfa   : > { %v416_v27 = vadd.f32 %v415_v23, %v387_v24  ;;  %v407_v33 = vadd.f32 %v694_v15, %v406_v30 }
  0xfc   : > { %v417_v29 = vadd.f32 %v416_v27, %v392_v26 }
  0xfe   : > { %v418_v32 = vadd.f32 %v417_v29, %v397_v28 }
 0x100   : > { %v419_v34 = vadd.f32 %v418_v32, %v402_v31 }
 0x102   : > { %v420_v36 = vadd.f32 %v419_v34, %v407_v33 }
 0x104   : > { %v421_v37 = vadd.f32 %v420_v36, %v412_v35 }
 0x106   : > { %v422_v38 = vrot.slane %v421_v37, 4 }
 0x108   : > { %v423_v39 = vadd.f32 %v422_v38, %v421_v37 }
 0x10a   : > { %v424_v40 = vrot.slane %v423_v39, 2 }
 0x10c   : > { %v425_v41 = vadd.f32 %v424_v40, %v423_v39 }
 0x10e   : > { %v426_v42 = vrot.slane %v425_v41, 1 }
 0x110   : > { %v427_v43 = vadd.f32 %v426_v42, %v425_v41 }
 0x112   : > { %v429_v44 = vmul.f32 0.015625, %v427_v43 }
 0x114   : > { %433 = vrot.lane.b32.xlu0 %v429_v44, %s921_s19  ;;  %v445_v53 = vmul.f32 %v444_v49, %v429_v44 }
 0x118   : > { %437 = vrot.lane.b32.xlu0 %v429_v44, %s922_s20  ;;  %s1124_s20 = scalar_lea.hbm %s1177_s6, %s714_s16 }
 0x186   : > { %v434_v48 = vpop.permute.xlu0 %433 }
 0x187   : > { %v435_v50 = vsel %vm432_vm1, 0.0, %v434_v48 }
 0x188   : > { %v442_v51 = vmul.f32 %v441_v47, %v435_v50 }
 0x18a   : > { %v438_v54 = vpop.permute.xlu0 %437  ;;  %v446_v56 = vadd.f32 %v445_v53, %v442_v51 }
 0x18b   : > { %v439_v55 = vsel %vm436_vm2, 0.0, %v438_v54 }
 0x18c   : > { %v449_v57 = vmul.f32 %v448_v52, %v439_v55 }
 0x18e   : > { %v450_v58 = vadd.f32 %v449_v57, %v446_v56 }
 0x190   : > { %v705_v59 = vmul.f32 -1.442695, %v450_v58 }
 0x192   : > { %819 = vpow2.f32 %v705_v59 }
 0x19f   : > { %v820_v60 = vpop.eup %819 }
 0x1a0   : > { %v454_v61 = vadd.f32 1.0, %v820_v60 }
 0x1a2   : > { %821 = vrcp.f32 %v454_v61  ;;  %v706_v61 = vld [vmem:[%s1175_s4] ss:$0 sm:$0xff] }
 0x1af   : > { %v822_v0 = vpop.eup %821 }
 0x1b0   : > { %v457_v1 = vadd.f32 1.0, %v822_v0  ;;  %v707_v0 = vld [vmem:[%s1176_s5] ss:$0 sm:$0xff] }
 0x1b2   : > { %v461_v2 = vrot.slane %v457_v1, %v460_v63 }
 0x1b4   : > { %v464_v3 = vmul.f32 %v461_v2, %v387_v24  ;;  %v462_v4 = vmul.f32 %v461_v2, %v377_v18  ;;  %v463_v5 = vmul.f32 %v461_v2, %v382_v21  ;;  %v465_v6 = vmul.f32 %v461_v2, %v392_v26 }
 0x1b5   : > { %v466_v7 = vmul.f32 %v461_v2, %v397_v28  ;;  %v467_v8 = vmul.f32 %v461_v2, %v402_v31  ;;  %v468_v9 = vmul.f32 %v461_v2, %v407_v33  ;;  %v469_v10 = vmul.f32 %v461_v2, %v412_v35 }
 0x1b6   : > { %474 = vadd.xlane.f32.xlu0 %v464_v3  ;;  %470 = vadd.xlane.f32.xlu1 %v462_v4 }
 0x1ba   : > { %472 = vadd.xlane.f32.xlu1 %v463_v5 }
 0x1be   : > { %476 = vadd.xlane.f32.xlu1 %v465_v6 }
 0x1c2   : > { %478 = vadd.xlane.f32.xlu1 %v466_v7 }
 0x1c6   : > { %480 = vadd.xlane.f32.xlu1 %v467_v8 }
 0x1ca   : > { %482 = vadd.xlane.f32.xlu1 %v468_v9 }
 0x1ce   : > { %484 = vadd.xlane.f32.xlu1 %v469_v10 }
 0x23f   : > { %v471_v11 = vpop.xlane.xlu1 %470  ;;  %v475_v13 = vpop.xlane.xlu0 %474 }
 0x240   : > { %v487_v12 = vmul.f32 0.0078125, %v471_v11  ;;  %v489_v16 = vmul.f32 0.0078125, %v475_v13 }
 0x242   : > { %v1061_v14 = vsub.f32 %v462_v4, %v487_v12  ;;  %v1067_v21 = vsub.f32 %v464_v3, %v489_v16 }
 0x243   : > { %v473_v15 = vpop.xlane.xlu1 %472 }
 0x244   : > { %v488_v17 = vmul.f32 0.0078125, %v473_v15  ;;  %v503_v18 = vmul.f32 %v1061_v14, %v1061_v14  ;;  %v505_v27 = vmul.f32 %v1067_v21, %v1067_v21 }
 0x246   : > { %v1065_v19 = vsub.f32 %v463_v5, %v488_v17  ;;  %511 = vadd.xlane.f32.xlu1 %v503_v18 }
 0x247   : > { %v477_v20 = vpop.xlane.xlu1 %476 }
 0x248   : > { %v490_v22 = vmul.f32 0.0078125, %v477_v20  ;;  %v504_v23 = vmul.f32 %v1065_v19, %v1065_v19 }
 0x24a   : > { %v1071_v24 = vsub.f32 %v465_v6, %v490_v22  ;;  %513 = vadd.xlane.f32.xlu1 %v504_v23 }
 0x24b   : > { %v479_v25 = vpop.xlane.xlu1 %478 }
 0x24c   : > { %v491_v26 = vmul.f32 0.0078125, %v479_v25  ;;  %v506_v28 = vmul.f32 %v1071_v24, %v1071_v24 }
 0x24e   : > { %v1077_v29 = vsub.f32 %v466_v7, %v491_v26  ;;  %515 = vadd.xlane.f32.xlu1 %v505_v27  ;;  %517 = vadd.xlane.f32.xlu0 %v506_v28 }
 0x24f   : > { %v481_v30 = vpop.xlane.xlu1 %480 }
 0x250   : > { %v492_v31 = vmul.f32 0.0078125, %v481_v30  ;;  %v507_v32 = vmul.f32 %v1077_v29, %v1077_v29 }
 0x252   : > { %v1081_v33 = vsub.f32 %v467_v8, %v492_v31  ;;  %519 = vadd.xlane.f32.xlu1 %v507_v32 }
 0x253   : > { %v483_v34 = vpop.xlane.xlu1 %482 }
 0x254   : > { %v493_v35 = vmul.f32 0.0078125, %v483_v34  ;;  %v508_v36 = vmul.f32 %v1081_v33, %v1081_v33 }
 0x256   : > { %v1085_v37 = vsub.f32 %v468_v9, %v493_v35  ;;  %521 = vadd.xlane.f32.xlu0 %v508_v36 }
 0x257   : > { %v485_v38 = vpop.xlane.xlu1 %484 }
 0x258   : > { %v494_v39 = vmul.f32 0.0078125, %v485_v38  ;;  %v509_v40 = vmul.f32 %v1085_v37, %v1085_v37 }
 0x25a   : > { %v1089_v41 = vsub.f32 %v469_v10, %v494_v39  ;;  %523 = vadd.xlane.f32.xlu1 %v509_v40 }
 0x25c   : > { %v510_v42 = vmul.f32 %v1089_v41, %v1089_v41 }
 0x25e   : > { %525 = vadd.xlane.f32.xlu0 %v510_v42 }
 0x2cf   : > { %v512_v43 = vpop.xlane.xlu1 %511 }
 0x2d0   : > { %v527_v44 = vmul.f32 0.0078125, %v512_v43 }
 0x2d2   : > { %v535_v45 = vadd.f32 1e-05, %v527_v44 }
 0x2d3   : > { %v514_v46 = vpop.xlane.xlu1 %513 }
 0x2d4   : > { %823 = vrsqrt.f32 %v535_v45  ;;  %v528_v47 = vmul.f32 0.0078125, %v514_v46 }
 0x2d6   : > { %v536_v48 = vadd.f32 1e-05, %v528_v47 }
 0x2d7   : > { %v518_v49 = vpop.xlane.xlu0 %517  ;;  %v516_v50 = vpop.xlane.xlu1 %515 }
 0x2d8   : > { %825 = vrsqrt.f32 %v536_v48  ;;  %v530_v51 = vmul.f32 0.0078125, %v518_v49  ;;  %v529_v52 = vmul.f32 0.0078125, %v516_v50 }
 0x2da   : > { %v538_v53 = vadd.f32 1e-05, %v530_v51  ;;  %v537_v54 = vadd.f32 1e-05, %v529_v52 }
 0x2db   : > { %v520_v55 = vpop.xlane.xlu1 %519 }
 0x2dc   : > { %827 = vrsqrt.f32 %v538_v53  ;;  %v531_v56 = vmul.f32 0.0078125, %v520_v55 }
 0x2dd   : > { %829 = vrsqrt.f32 %v537_v54 }
 0x2de   : > { %v539_v57 = vadd.f32 1e-05, %v531_v56 }
 0x2df   : > { %v522_v58 = vpop.xlane.xlu0 %521 }
 0x2e0   : > { %831 = vrsqrt.f32 %v539_v57  ;;  %v532_v59 = vmul.f32 0.0078125, %v522_v58 }
 0x2e1   : > { %v824_v60 = vpop.eup %823 }
 0x2e2   : > { %v551_v62 = vmul.f32 %v824_v60, %v1061_v14  ;;  %v540_v63 = vadd.f32 1e-05, %v532_v59 }
 0x2e3   : > { %v524_v1 = vpop.xlane.xlu1 %523 }
 0x2e4   : > { %v566_v2 = vmul.f32 %v706_v61, %v551_v62  ;;  %833 = vrsqrt.f32 %v540_v63  ;;  %v533_v3 = vmul.f32 0.0078125, %v524_v1 }
 0x2e5   : > { %v826_v4 = vpop.eup %825 }
 0x2e6   : > { %v581_v5 = vadd.f32 %v707_v0, %v566_v2  ;;  %v552_v6 = vmul.f32 %v826_v4, %v1065_v19  ;;  %v541_v7 = vadd.f32 1e-05, %v533_v3 }
 0x2e7   : > { %v526_v8 = vpop.xlane.xlu0 %525 }
 0x2e8   : > { %589 = vst [vmem:[%s1104_s15] sm:$0xff] %v581_v5  ;;  %v567_v9 = vmul.f32 %v706_v61, %v552_v6  ;;  %835 = vrsqrt.f32 %v541_v7  ;;  %v534_v10 = vmul.f32 0.0078125, %v526_v8 }
 0x2e9   : > { %v828_v11 = vpop.eup %827 }
 0x2ea   : > { %v830_v12 = vpop.eup %829  ;;  %v582_v13 = vadd.f32 %v707_v0, %v567_v9  ;;  %v554_v14 = vmul.f32 %v828_v11, %v1071_v24  ;;  %v542_v15 = vadd.f32 1e-05, %v534_v10 }
 0x2eb   : > { %v553_v16 = vmul.f32 %v830_v12, %v1067_v21 }
 0x2ec   : > { %590 = vst [vmem:[%s1104_s15 + $0x8] sm:$0xff] %v582_v13  ;;  %v569_v17 = vmul.f32 %v706_v61, %v554_v14  ;;  %837 = vrsqrt.f32 %v542_v15 }
 0x2ed   : > { %v832_v18 = vpop.eup %831  ;;  %v568_v19 = vmul.f32 %v706_v61, %v553_v16 }
 0x2ee   : > { %v584_v20 = vadd.f32 %v707_v0, %v569_v17  ;;  %v555_v22 = vmul.f32 %v832_v18, %v1077_v29 }
 0x2ef   : > { %v583_v23 = vadd.f32 %v707_v0, %v568_v19 }
 0x2f0   : > { %592 = vst [vmem:[%s1104_s15 + $0x18] sm:$0xff] %v584_v20  ;;  %v570_v25 = vmul.f32 %v706_v61, %v555_v22 }
 0x2f1   : > { %v834_v26 = vpop.eup %833  ;;  %591 = vst [vmem:[%s1104_s15 + $0x10] sm:$0xff] %v583_v23 }
 0x2f2   : > { %v585_v24 = vadd.f32 %v707_v0, %v570_v25  ;;  %v556_v21 = vmul.f32 %v834_v26, %v1081_v33 }
 0x2f4   : > { %593 = vst [vmem:[%s1104_s15 + $0x20] sm:$0xff] %v585_v24  ;;  %v571_v27 = vmul.f32 %v706_v61, %v556_v21 }
 0x2f5   : > { %v836_v28 = vpop.eup %835 }
 0x2f6   : > { %v586_v30 = vadd.f32 %v707_v0, %v571_v27  ;;  %v557_v31 = vmul.f32 %v836_v28, %v1085_v37 }
 0x2f8   : > { %594 = vst [vmem:[%s1104_s15 + $0x28] sm:$0xff] %v586_v30  ;;  %v572_v29 = vmul.f32 %v706_v61, %v557_v31 }
 0x2f9   : > { %v838_v32 = vpop.eup %837 }
 0x2fa   : > { %v587_v34 = vadd.f32 %v707_v0, %v572_v29  ;;  %v558_v35 = vmul.f32 %v838_v32, %v1089_v41 }
 0x2fc   : > { %595 = vst [vmem:[%s1104_s15 + $0x30] sm:$0xff] %v587_v34  ;;  %v573_v36 = vmul.f32 %v706_v61, %v558_v35 }
 0x2fe   : > { %v588_v33 = vadd.f32 %v707_v0, %v573_v36 }
 0x300   : > { %596 = vst [vmem:[%s1104_s15 + $0x38] sm:$0xff] %v588_v33 }
 0x301   : > { %867 = shalt.err (!%p864_p2)
}
 0x302   : > { %s868_s9 = scalar_lea.hbm %s1124_s20, 1024  ;;  %s872_s13 = scalar_lea.hbm %s1177_s6, 2048 }
 0x303   : > { %p869_p3 = scmp.ne.s32.totalorder %s1124_s20, %s868_s9  ;;  %p873_p8 = scmp.lt.s32.totalorder %s1124_s20, %s1177_s6 }
 0x304   : > { %p874_p11 = scmp.lt.s32.totalorder %s872_s13, %s868_s9 }
 0x305   : > { %p870_p4 = pnand %p869_p3, %p999_p5 }
 0x306   : > { %p875_p9 = por %p874_p11, %p873_p8 }
 0x307   : > { %p871_p7 = pneg %p870_p4 }
 0x309   : > { %p876_p10 = pnand %p875_p9, %p871_p7 }
 0x30b   : > { %879 = shalt.err (!%p876_p10)
}
 0x30c   : > { %s924_s16 = smov 128   ;;  %s925_s18 = smov 8  }
 0x30d   : > { %769 = dma.vmem_to_hbm [thread:$0]  (%p999_p5), %s1126_s17, 1024, %s1124_s20, %s1131_s26, %s924_s16, %s924_s16, %s925_s18  }
 0x30e PF: > { %p781_p12 = scmp.ge.s32.totalorder %s918_s24, 2  ;;  %s626_s19 = sand.u32 1, %s906_s21  }
 0x30f   : > { %s627_s28 = scalar_lea.sflag [#allocation3], %s626_s19 }
 0x310   : > { %p776_p13 = pnand %p781_p12, %p1003_p6 }
 0x312   : > { %p777_p0 = pneg %p776_p13 }
 0x314   : > { %901 = dma.done.wait (%p777_p0), %s627_s28, 1024  }
 0x315   : > { %903 = vsyncadd (%p777_p0), %s627_s28, 4294966272  ;;  %p17_p1 = scmp.ge.s32.totalorder %s986_s27, 4   ;;  %s1181_s21 = smov %s910_s22 }
 0x316   : > { %s1182_s22 = smov %s914_s23  ;;  %s1183_s23 = smov %s997_s30 }
 0x317   : > { %s1184_s24 = smov %s986_s27  ;;  %19 = sbr.rel (!%p17_p1) target bundleno = 4 (0x4), region = 84 }
 0x31c   :  { %632 = vsyncpa [#allocation3], 1 }
 0x31d   :  { %634 = vsyncpa [#allocation3 + $0x1], 1 }
 0x31e   :  { %635 = vsyncpa [#allocation4], 1 }
 0x31f   :  { %637 = vsyncpa [#allocation4 + $0x1], 1 }

</bundles_post_ra>
